<compile_context>
chip_gen: v7x
topology: tpu7x:2x2x1
jax: 0.10.0
libtpu: 0.0.40
codegen_flags: <defaults>
</compile_context>

<pallas_src>
import functools

import jax
import jax.numpy as jnp
from jax.experimental import pallas as pl
from jax.experimental.pallas import tpu as pltpu

IN_DIM = 2
H1 = 512
H2 = 256
OUT_DIM = 3
OUT_PAD = 128  # lane-padded width of the layer-3 weight (MXU-friendly)


def _round_up(n, m):
    return ((n + m - 1) // m) * m


def _mlp_kernel(x_ref, w1_ref, b1_ref, w2_ref, b2_ref, w3_ref, b3_ref, o_ref):
    x = x_ref[...]                                   # (tm, 2)   f32
    w1 = w1_ref[...]                                 # (2, 512)  f32

    # ---- Layer 1 + ReLU: K=2, so a VPU outer product beats a degenerate MXU
    # matmul. ReLU is fused with the bf16 downcast so the f32 (tm, 512) tensor
    # is consumed immediately (no standalone cast pass / extra VMEM copy).
    # If a bundle dump ever shows the VALU slot saturating at large tm on
    # v6e/v7x, move this onto the MXU with a zero-padded (128, 512) w1 instead.
    h1 = x[:, 0:1] * w1[0:1, :] + x[:, 1:2] * w1[1:2, :] + b1_ref[...]
    h1 = jnp.maximum(h1, 0.0).astype(w2_ref.dtype)   # (tm, 512) bf16

    # ---- Layer 2 + ReLU: the real MXU work (bf16 operands, f32 accumulation).
    h2 = jnp.dot(h1, w2_ref[...], preferred_element_type=jnp.float32) + b2_ref[...]
    h2 = jnp.maximum(h2, 0.0).astype(w3_ref.dtype)   # (tm, 256) bf16

    # ---- Layer 3: lane-padded (256, 128) weight keeps the MXU tile dense; only
    # the 3 valid lanes are written out (masked store -> 12 B/row HBM writeback).
    out = jnp.dot(h2, w3_ref[...], preferred_element_type=jnp.float32)  # (tm, 128)
    o_ref[...] = (out + b3_ref[...])[:, :OUT_DIM]    # (tm, 3) f32


def prepare_params(params, *, use_bf16=True):
    """One-time layout prep (hoisted out of the per-call path).

    `params` uses the PyTorch nn.Linear convention (out_features, in_features).
    Returns kernel-ready operands: (in, out) weights, (1, out) biases, with the
    last layer zero-padded to OUT_PAD lanes. Set use_bf16=False if the ~1e-2
    deviation of bf16 matmul operands vs the f32 reference matters downstream.
    """
    mat_dtype = jnp.bfloat16 if use_bf16 else jnp.float32
    w1_t = jnp.asarray(params["w1"], jnp.float32).T                     # (2, 512)
    b1 = jnp.asarray(params["b1"], jnp.float32).reshape(1, H1)
    w2_t = jnp.asarray(params["w2"], jnp.float32).T.astype(mat_dtype)   # (512, 256)
    b2 = jnp.asarray(params["b2"], jnp.float32).reshape(1, H2)
    w3_t = jnp.asarray(params["w3"], jnp.float32).T                     # (256, 3)
    w3_p = jnp.zeros((H2, OUT_PAD), jnp.float32).at[:, :OUT_DIM].set(w3_t)
    w3_p = w3_p.astype(mat_dtype)
    b3_p = jnp.zeros((1, OUT_PAD), jnp.float32).at[:, :OUT_DIM].set(
        jnp.asarray(params["b3"], jnp.float32).reshape(1, OUT_DIM))
    return (w1_t, b1, w2_t, b2, w3_p, b3_p)


@functools.partial(jax.jit, static_argnames=("block_rows",))
def mountain_car_network(x, prepared, *, block_rows=1024):
    """Forward pass. x: (B, 2) f32 -> (B, 3) f32.

    block_rows: max batch rows per grid step. 1024 keeps per-tile intermediates
    (~6-7 MiB including double buffering) inside every generation's default
    scoped VMEM (16 MiB v5e, 32 MiB v6e/v7x) while amortizing the ~0.35 us fixed
    per-grid-step overhead. Pass 2048 for very large batches (and raise
    vmem_limit_bytes on v5e if you do).
    """
    w1_t, b1, w2_t, b2, w3_p, b3_p = prepared
    B = x.shape[0]
    x = x.astype(jnp.float32)

    # Tiny-batch guard only: keep the row tile a legal multiple of 8 sublanes.
    b_eff = B
    if B < 8:
        x = jnp.pad(x, ((0, 8 - B), (0, 0)))
        b_eff = 8

    # Round any user-supplied tile to a multiple of 8 (sublane tiling rule), and
    # cap it so the grid has >= 2 steps whenever possible: the batch axis is
    # "parallel", so this lets both v7x TensorCores get work.
    br = max(8, _round_up(block_rows, 8))
    tm = min(br, _round_up(pl.cdiv(b_eff, 2), 8))
    grid = (pl.cdiv(b_eff, tm),)  # ragged tail handled by Pallas block masking

    weight_bytes = (w1_t.size * 4 + b1.size * 4
                    + w2_t.size * w2_t.dtype.itemsize + b2.size * 4
                    + w3_p.size * w3_p.dtype.itemsize + b3_p.size * 4)
    cost = pl.CostEstimate(
        flops=2 * b_eff * (IN_DIM * H1 + H1 * H2 + H2 * OUT_PAD),
        transcendentals=0,
        bytes_accessed=b_eff * IN_DIM * 4 + b_eff * OUT_DIM * 4 + weight_bytes,
    )

    def resident(a):
        # Constant block index across the grid -> stays VMEM-resident (~330 KB
        # total for all weights/biases; double-buffer duplication is negligible).
        return pl.BlockSpec(a.shape, lambda i: (0, 0))

    out = pl.pallas_call(
        _mlp_kernel,
        out_shape=jax.ShapeDtypeStruct((b_eff, OUT_DIM), jnp.float32),
        grid=grid,
        in_specs=[
            pl.BlockSpec((tm, IN_DIM), lambda i: (i, 0)),
            resident(w1_t), resident(b1), resident(w2_t), resident(b2),
            resident(w3_p), resident(b3_p),
        ],
        out_specs=pl.BlockSpec((tm, OUT_DIM), lambda i: (i, 0)),
        compiler_params=pltpu.CompilerParams(
            dimension_semantics=("parallel",)),
        cost_estimate=cost,
    )(x, w1_t, b1, w2_t, b2, w3_p, b3_p)

    return out[:B] if b_eff != B else out


def init_params(key):
    """Deterministic synthetic parameters (PyTorch nn.Linear shape convention)."""
    ks = jax.random.split(key, 6)

    def uniform_init(k, shape, fan_in):
        bound = 1.0 / jnp.sqrt(float(fan_in))
        return jax.random.uniform(k, shape, jnp.float32, -bound, bound)

    return {
        "w1": uniform_init(ks[0], (H1, IN_DIM), IN_DIM),
        "b1": uniform_init(ks[1], (H1,), IN_DIM),
        "w2": uniform_init(ks[2], (H2, H1), H1),
        "b2": uniform_init(ks[3], (H2,), H1),
        "w3": uniform_init(ks[4], (OUT_DIM, H2), H2),
        "b3": uniform_init(ks[5], (OUT_DIM,), H2),
    }


def _reference_forward_f32(x, params):
    """Pure f32 PyTorch-semantics reference."""
    h1 = jnp.maximum(x @ params["w1"].T + params["b1"], 0.0)
    h2 = jnp.maximum(h1 @ params["w2"].T + params["b2"], 0.0)
    return h2 @ params["w3"].T + params["b3"]


def _reference_forward_mirror(x, prepared):
    """Reference mirroring the kernel's math (bf16 matmul operands, f32 acc)."""
    w1_t, b1, w2_t, b2, w3_p, b3_p = prepared
    x = x.astype(jnp.float32)
    h1 = jnp.maximum(x[:, 0:1] * w1_t[0:1, :] + x[:, 1:2] * w1_t[1:2, :] + b1, 0.0)
    h1 = h1.astype(w2_t.dtype)
    h2 = jnp.maximum(
        jnp.dot(h1, w2_t, preferred_element_type=jnp.float32) + b2, 0.0)
    h2 = h2.astype(w3_p.dtype)
    out = jnp.dot(h2, w3_p, preferred_element_type=jnp.float32) + b3_p
    return out[:, :OUT_DIM]


if __name__ == "__main__":
    key = jax.random.PRNGKey(0)
    pkey, xkey, xkey2, xkey3 = jax.random.split(key, 4)
    params = init_params(pkey)
    prepared = prepare_params(params, use_bf16=True)   # one-time layout prep

    # MountainCar observation is 2-dimensional (position, velocity); batch = 8.
    x = jax.random.normal(xkey, (8, 2), jnp.float32)
    out = jax.block_until_ready(mountain_car_network(x, prepared))
    assert out.shape == (8, 3), out.shape
    assert jnp.allclose(out, _reference_forward_mirror(x, prepared),
                        atol=1e-4, rtol=1e-4), "mismatch vs bf16-matched reference"
    assert jnp.allclose(out, _reference_forward_f32(x, params),
                        atol=2e-2, rtol=2e-2), "mismatch vs f32 reference"

    # Multi-step grid + ragged tail (40 rows, tile 16 -> 3 steps, last block masked).
    xb = jax.random.normal(xkey2, (40, 2), jnp.float32)
    outb = jax.block_until_ready(mountain_car_network(xb, prepared, block_rows=16))
    assert outb.shape == (40, 3), outb.shape
    assert jnp.allclose(outb, _reference_forward_mirror(xb, prepared),
                        atol=1e-4, rtol=1e-4), "mismatch on tiled batch"

    # Odd batch on the default path (tm=8, 2 steps, ragged tail; no pad/slice ops).
    xc = jax.random.normal(xkey3, (13, 2), jnp.float32)
    outc = jax.block_until_ready(mountain_car_network(xc, prepared))
    assert outc.shape == (13, 3), outc.shape
    assert jnp.allclose(outc, _reference_forward_mirror(xc, prepared),
                        atol=1e-4, rtol=1e-4), "mismatch on ragged batch"

    print("KERNEL_OK")
</pallas_src>

<mosaic_0001>
module attributes {stable_mosaic.version = 11 : i64} {
  func.func @_mlp_kernel(%arg0: i32, %arg1: memref<8x2xf32, #tpu.memory_space<vmem>>, %arg2: memref<2x512xf32, #tpu.memory_space<vmem>>, %arg3: memref<1x512xf32, #tpu.memory_space<vmem>>, %arg4: memref<512x256xbf16, #tpu.memory_space<vmem>>, %arg5: memref<1x256xf32, #tpu.memory_space<vmem>>, %arg6: memref<256x128xbf16, #tpu.memory_space<vmem>>, %arg7: memref<1x128xf32, #tpu.memory_space<vmem>>, %arg8: memref<8x3xf32, #tpu.memory_space<vmem>>) attributes {dimension_semantics = [#tpu.dimension_semantics<parallel>], iteration_bounds = array<i64: 1>, scalar_prefetch = 0 : i64, scratch_operands = 0 : i64, tpu.core_type = #tpu.core_type<tc>, window_params = [{transform_indices = @transform_0, window_bounds = array<i64: 8, 2>}, {pipeline_mode = #tpu.pipeline_mode<synchronous>, transform_indices = @transform_1, window_bounds = array<i64: 2, 512>}, {pipeline_mode = #tpu.pipeline_mode<synchronous>, transform_indices = @transform_2, window_bounds = array<i64: 1, 512>}, {pipeline_mode = #tpu.pipeline_mode<synchronous>, transform_indices = @transform_3, window_bounds = array<i64: 512, 256>}, {pipeline_mode = #tpu.pipeline_mode<synchronous>, transform_indices = @transform_4, window_bounds = array<i64: 1, 256>}, {pipeline_mode = #tpu.pipeline_mode<synchronous>, transform_indices = @transform_5, window_bounds = array<i64: 256, 128>}, {pipeline_mode = #tpu.pipeline_mode<synchronous>, transform_indices = @transform_6, window_bounds = array<i64: 1, 128>}, {transform_indices = @transform_7, window_bounds = array<i64: 8, 3>}]} {
    %c0 = arith.constant 0 : index
    %c0_0 = arith.constant 0 : index
    %0 = vector.load %arg1[%c0, %c0_0] : memref<8x2xf32, #tpu.memory_space<vmem>>, vector<8x2xf32>
    %c0_1 = arith.constant 0 : index
    %c0_2 = arith.constant 0 : index
    %1 = vector.load %arg2[%c0_1, %c0_2] : memref<2x512xf32, #tpu.memory_space<vmem>>, vector<2x512xf32>
    %2 = vector.extract_strided_slice %0 {offsets = [0, 0], sizes = [8, 1], strides = [1, 1]} : vector<8x2xf32> to vector<8x1xf32>
    %3 = vector.extract_strided_slice %1 {offsets = [0, 0], sizes = [1, 512], strides = [1, 1]} : vector<2x512xf32> to vector<1x512xf32>
    %4 = vector.broadcast %2 : vector<8x1xf32> to vector<8x512xf32>
    %5 = vector.broadcast %3 : vector<1x512xf32> to vector<8x512xf32>
    %6 = arith.mulf %4, %5 : vector<8x512xf32>
    %7 = vector.extract_strided_slice %0 {offsets = [0, 1], sizes = [8, 1], strides = [1, 1]} : vector<8x2xf32> to vector<8x1xf32>
    %8 = vector.extract_strided_slice %1 {offsets = [1, 0], sizes = [1, 512], strides = [1, 1]} : vector<2x512xf32> to vector<1x512xf32>
    %9 = vector.broadcast %7 : vector<8x1xf32> to vector<8x512xf32>
    %10 = vector.broadcast %8 : vector<1x512xf32> to vector<8x512xf32>
    %11 = arith.mulf %9, %10 : vector<8x512xf32>
    %12 = arith.addf %6, %11 : vector<8x512xf32>
    %c0_3 = arith.constant 0 : index
    %c0_4 = arith.constant 0 : index
    %13 = vector.load %arg3[%c0_3, %c0_4] : memref<1x512xf32, #tpu.memory_space<vmem>>, vector<1x512xf32>
    %14 = vector.broadcast %13 : vector<1x512xf32> to vector<8x512xf32>
    %15 = arith.addf %12, %14 : vector<8x512xf32>
    %cst = arith.constant 0.000000e+00 : f32
    %16 = vector.broadcast %cst : f32 to vector<8x512xf32>
    %17 = arith.maximumf %15, %16 : vector<8x512xf32>
    %18 = arith.truncf %17 : vector<8x512xf32> to vector<8x512xbf16>
    %c0_5 = arith.constant 0 : index
    %c0_6 = arith.constant 0 : index
    %19 = vector.load %arg4[%c0_5, %c0_6] : memref<512x256xbf16, #tpu.memory_space<vmem>>, vector<512x256xbf16>
    %cst_7 = arith.constant dense<0.000000e+00> : vector<8x256xf32>
    %20 = tpu.matmul %18, %19, %cst_7 {dimension_numbers = #tpu.dot_dimension_numbers<[1], [0], [0], [1], [0, 0, 1, 1], [], []>} : vector<8x512xbf16>, vector<512x256xbf16>, vector<8x256xf32> -> vector<8x256xf32>
    %c0_8 = arith.constant 0 : index
    %c0_9 = arith.constant 0 : index
    %21 = vector.load %arg5[%c0_8, %c0_9] : memref<1x256xf32, #tpu.memory_space<vmem>>, vector<1x256xf32>
    %22 = vector.broadcast %21 : vector<1x256xf32> to vector<8x256xf32>
    %23 = arith.addf %20, %22 : vector<8x256xf32>
    %cst_10 = arith.constant 0.000000e+00 : f32
    %24 = vector.broadcast %cst_10 : f32 to vector<8x256xf32>
    %25 = arith.maximumf %23, %24 : vector<8x256xf32>
    %26 = arith.truncf %25 : vector<8x256xf32> to vector<8x256xbf16>
    %c0_11 = arith.constant 0 : index
    %c0_12 = arith.constant 0 : index
    %27 = vector.load %arg6[%c0_11, %c0_12] : memref<256x128xbf16, #tpu.memory_space<vmem>>, vector<256x128xbf16>
    %cst_13 = arith.constant dense<0.000000e+00> : vector<8x128xf32>
    %28 = tpu.matmul %26, %27, %cst_13 {dimension_numbers = #tpu.dot_dimension_numbers<[1], [0], [0], [1], [0, 0, 1, 1], [], []>} : vector<8x256xbf16>, vector<256x128xbf16>, vector<8x128xf32> -> vector<8x128xf32>
    %c0_14 = arith.constant 0 : index
    %c0_15 = arith.constant 0 : index
    %29 = vector.load %arg7[%c0_14, %c0_15] : memref<1x128xf32, #tpu.memory_space<vmem>>, vector<1x128xf32>
    %30 = vector.broadcast %29 : vector<1x128xf32> to vector<8x128xf32>
    %31 = arith.addf %28, %30 : vector<8x128xf32>
    %32 = vector.extract_strided_slice %31 {offsets = [0, 0], sizes = [8, 3], strides = [1, 1]} : vector<8x128xf32> to vector<8x3xf32>
    %c0_16 = arith.constant 0 : index
    %c0_17 = arith.constant 0 : index
    %33 = vector.load %arg8[%c0_16, %c0_17] : memref<8x3xf32, #tpu.memory_space<vmem>>, vector<8x3xf32>
    tpu.vector_store %arg8[%c0_16, %c0_17], %32 {strides = array<i32>} : memref<8x3xf32, #tpu.memory_space<vmem>>, vector<8x3xf32>,
    return
  }
  func.func @transform_0(%arg0: i32) -> (i32, i32) {
    %c0_i32 = arith.constant 0 : i32
    %c0_i32_0 = arith.constant 0 : i32
    return %arg0, %c0_i32 : i32, i32
  }
  func.func @transform_1(%arg0: i32) -> (i32, i32) {
    %c0_i32 = arith.constant 0 : i32
    %c0_i32_0 = arith.constant 0 : i32
    %c0_i32_1 = arith.constant 0 : i32
    return %c0_i32, %c0_i32_0 : i32, i32
  }
  func.func @transform_2(%arg0: i32) -> (i32, i32) {
    %c0_i32 = arith.constant 0 : i32
    %c0_i32_0 = arith.constant 0 : i32
    %c0_i32_1 = arith.constant 0 : i32
    return %c0_i32, %c0_i32_0 : i32, i32
  }
  func.func @transform_3(%arg0: i32) -> (i32, i32) {
    %c0_i32 = arith.constant 0 : i32
    %c0_i32_0 = arith.constant 0 : i32
    %c0_i32_1 = arith.constant 0 : i32
    return %c0_i32, %c0_i32_0 : i32, i32
  }
  func.func @transform_4(%arg0: i32) -> (i32, i32) {
    %c0_i32 = arith.constant 0 : i32
    %c0_i32_0 = arith.constant 0 : i32
    %c0_i32_1 = arith.constant 0 : i32
    return %c0_i32, %c0_i32_0 : i32, i32
  }
  func.func @transform_5(%arg0: i32) -> (i32, i32) {
    %c0_i32 = arith.constant 0 : i32
    %c0_i32_0 = arith.constant 0 : i32
    %c0_i32_1 = arith.constant 0 : i32
    return %c0_i32, %c0_i32_0 : i32, i32
  }
  func.func @transform_6(%arg0: i32) -> (i32, i32) {
    %c0_i32 = arith.constant 0 : i32
    %c0_i32_0 = arith.constant 0 : i32
    %c0_i32_1 = arith.constant 0 : i32
    return %c0_i32, %c0_i32_0 : i32, i32
  }
  func.func @transform_7(%arg0: i32) -> (i32, i32) {
    %c0_i32 = arith.constant 0 : i32
    %c0_i32_0 = arith.constant 0 : i32
    return %arg0, %c0_i32 : i32, i32
  }
}

</mosaic_0001>

<bundles_post_ra>
// kernel: mountain_car_network.1
= control target key start
LH: loop header
LB: loop body
LE: loop exit
PB: predicated region body
PF: predicated region fallthrough
CT: control target
= control target key end

     0   :  { %12 = vsyncpa [#allocation3], 0  ;;  %s1235_s0 = inlined_call_operand.vmem [shape: f32[8,2], index: 0, kind: input, shape index: {}]   ;;  %s1236_s1 = inlined_call_operand.vmem [shape: f32[2,512], index: 1, kind: input, shape index: {}]   ;;  %s1237_s2 = inlined_call_operand.vmem [shape: f32[1,512], index: 2, kind: input, shape index: {}]   ;;  %s1238_s3 = inlined_call_operand.hbm [shape: bf16[512,256], index: 3, kind: input, shape index: {}]   ;;  %s1239_s4 = inlined_call_operand.vmem [shape: f32[1,256], index: 4, kind: input, shape index: {}]   ;;  %s1240_s5 = inlined_call_operand.hbm [shape: bf16[256,128], index: 5, kind: input, shape index: {}]   ;;  %s1241_s6 = inlined_call_operand.vmem [shape: f32[1,128], index: 6, kind: input, shape index: {}]   ;;  %s1242_s7 = inlined_call_operand.vmem [shape: f32[8,3], index: 7, kind: output, shape index: {}]  }
   0x1   :  { %13 = vsyncpa [#allocation5], 0  ;;  %s1127_s24 = smov [#allocation2]   ;;  %s1079_s28 = scalar_lea.hbm %s1238_s3, 8192 }
   0x2   :  { %s25_s25 = sshll.u32 %s1127_s24, 4  ;;  %p1080_p0 = scmp.ne.s32.totalorder %s1238_s3, %s1079_s28  ;;  %s26_s25 = int_to_ptr.vmem [resolvable:$true] %s25_s25 }
   0x3   :  { %p1083_p1 = scmp.lt.u32.totalorder %s1079_s28, %s1238_s3 }
   0x5   :  { %p1085_p2 = pnand %p1083_p1, %p1080_p0 }
   0x7   :  { %1088 = shalt.err (!%p1085_p2)
}
   0x8   :  { %s1089_s10 = scalar_lea.vmem %s26_s25, 8192  ;;  %p1094_p4 = scmp.lt.s32.totalorder %s26_s25, %s26_s25 }
   0x9   :  { %p1090_p3 = scmp.ne.s32.totalorder %s26_s25, %s1089_s10  ;;  %p1095_p5 = scmp.lt.s32.totalorder %s1089_s10, %s1089_s10 }
   0xb   :  { %p1096_p6 = por %p1095_p5, %p1094_p4 }
   0xd   :  { %p1097_p7 = pnand %p1096_p6, %p1090_p3 }
   0xf   :  { %1100 = shalt.err (!%p1097_p7)
}
  0x10   :  { %s1128_s11 = smov 128   ;;  %s1129_s12 = smov 8  }
  0x11   :  { %31 = dma.hbm_to_vmem [thread:$0]  %s1238_s3, 8192, %s26_s25, [#allocation3], %s1128_s11, %s1128_s11, %s1129_s12  }
  0x12   :  { %s1130_s15 = smov [#allocation4]   ;;  %s1101_s19 = scalar_lea.hbm %s1240_s5, 2048 }
  0x13   :  { %s39_s16 = sshll.u32 %s1130_s15, 4  ;;  %p1102_p8 = scmp.ne.s32.totalorder %s1240_s5, %s1101_s19  ;;  %s40_s16 = int_to_ptr.vmem [resolvable:$true] %s39_s16 }
  0x14   :  { %p1105_p9 = scmp.lt.u32.totalorder %s1101_s19, %s1240_s5 }
  0x16   :  { %p1107_p10 = pnand %p1105_p9, %p1102_p8 }
  0x18   :  { %1110 = shalt.err (!%p1107_p10)
}
  0x19   :  { %s1111_s24 = scalar_lea.vmem %s40_s16, 2048  ;;  %p1116_p12 = scmp.lt.s32.totalorder %s40_s16, %s40_s16 }
  0x1a   :  { %p1112_p11 = scmp.ne.s32.totalorder %s40_s16, %s1111_s24  ;;  %p1117_p13 = scmp.lt.s32.totalorder %s1111_s24, %s1111_s24 }
  0x1c   :  { %p1118_p0 = por %p1117_p13, %p1116_p12 }
  0x1e   :  { %p1119_p1 = pnand %p1118_p0, %p1112_p11 }
  0x20   :  { %1122 = shalt.err (!%p1119_p1)
}
  0x21   :  { %s1131_s3 = smov 64   ;;  %s1132_s25 = smov 4  }
  0x22   :  { %45 = dma.hbm_to_vmem [thread:$0]  %s1240_s5, 2048, %s40_s16, [#allocation5], %s1131_s3, %s1131_s3, %s1132_s25  }
  0x23   :  { %1123 = dma.done.wait [#allocation3], 8192  }
  0x24   :  { %1124 = vsyncadd [#allocation3], 4294959104 }
  0x25   :  { %1125 = dma.done.wait [#allocation5], 2048  }
  0x26   :  { %1126 = vsyncadd [#allocation5], 4294965248  ;;  %v1133_v0 = vmov 0   ;;  %v55_v1 = vld [vmem:[%s1235_s0] sm:$0xff]  ;;  %v967_v2 = vld [vmem:[#allocation2 + $0x4] ss:$8 sps:$4 sm:$0xff]  }
  0x27   :  { %965 = vset.pattern.permute.xlu0 %v1133_v0  ;;  %v969_v3 = vld [vmem:[#allocation2 + $0x104] ss:$8 sps:$4 sm:$0xff]   ;;  %v971_v4 = vld [vmem:[#allocation2] ss:$8 sps:$4 sm:$0xff]   ;;  %581 = vmatprep.subr.bf16.mxu1 %v967_v2  ;;  %v973_v6 = vld [vmem:[#allocation2 + $0x14] ss:$8 sps:$4 sm:$0xff]  }
  0x28   :  { %59 = vperm.xlu0 %965, %v55_v1   ;;  %v972_v5 = vld [vmem:[#allocation2 + $0x100] ss:$8 sps:$4 sm:$0xff]   ;;  %622 = vmatprep.subr.bf16.mxu0 %v969_v3  ;;  %v975_v7 = vld [vmem:[#allocation2 + $0x114] ss:$8 sps:$4 sm:$0xff]   ;;  %v1134_v8 = vmov 1   ;;  %vm842_vm0 = vcmask 23552  }
  0x29   :  { %582 = vmatpush1.bf16.msra.mxu1 %v971_v4  ;;  %623 = vmatpush1.bf16.msra.mxu0 %v972_v5  ;;  %v977_v9 = vld [vmem:[#allocation2 + $0x10] ss:$8 sps:$4 sm:$0xff]   ;;  %v979_v11 = vld [vmem:[#allocation2 + $0x24] ss:$8 sps:$4 sm:$0xff]   ;;  %v983_v13 = vld [vmem:[#allocation2 + $0x20] ss:$8 sps:$4 sm:$0xff]   ;;  %v63_v4 = vlaneseq }
  0x2a   :  { %v978_v10 = vld [vmem:[#allocation2 + $0x110] ss:$8 sps:$4 sm:$0xff]   ;;  %583 = vmatprep.subr.bf16.mxu1 %v973_v6  ;;  %624 = vmatprep.subr.bf16.mxu0 %v975_v7  ;;  %v981_v12 = vld [vmem:[#allocation2 + $0x124] ss:$8 sps:$4 sm:$0xff]   ;;  %v984_v14 = vld [vmem:[#allocation2 + $0x120] ss:$8 sps:$4 sm:$0xff]  }
  0x2b   :  { %v985_v15 = vld [vmem:[#allocation2 + $0x34] ss:$8 sps:$4 sm:$0xff]   ;;  %v989_v17 = vld [vmem:[#allocation2 + $0x30] ss:$8 sps:$4 sm:$0xff]   ;;  %v991_v19 = vld [vmem:[#allocation2 + $0x44] ss:$8 sps:$4 sm:$0xff]  }
  0x2c   :  { %966 = vset.pattern.permute.xlu0 %v1134_v8  ;;  %v987_v16 = vld [vmem:[#allocation2 + $0x134] ss:$8 sps:$4 sm:$0xff]   ;;  %v990_v18 = vld [vmem:[#allocation2 + $0x130] ss:$8 sps:$4 sm:$0xff]   ;;  %v993_v20 = vld [vmem:[#allocation2 + $0x144] ss:$8 sps:$4 sm:$0xff]  }
  0x2d   :  { %104 = vperm.xlu0 %966, %v55_v1   ;;  %584 = vmatpush1.bf16.msra.mxu1 %v977_v9  ;;  %v995_v21 = vld [vmem:[#allocation2 + $0x40] ss:$8 sps:$4 sm:$0xff]   ;;  %v997_v23 = vld [vmem:[#allocation2 + $0x54] ss:$8 sps:$4 sm:$0xff]   ;;  %v1001_v25 = vld [vmem:[#allocation2 + $0x50] ss:$8 sps:$4 sm:$0xff]  }
  0x2e   :  { %625 = vmatpush1.bf16.msra.mxu0 %v978_v10  ;;  %585 = vmatprep.subr.bf16.mxu1 %v979_v11  ;;  %v996_v22 = vld [vmem:[#allocation2 + $0x140] ss:$8 sps:$4 sm:$0xff]   ;;  %v999_v24 = vld [vmem:[#allocation2 + $0x154] ss:$8 sps:$4 sm:$0xff]   ;;  %v1002_v26 = vld [vmem:[#allocation2 + $0x150] ss:$8 sps:$4 sm:$0xff]  }
  0x2f   :  { %626 = vmatprep.subr.bf16.mxu0 %v981_v12  ;;  %v1003_v27 = vld [vmem:[#allocation2 + $0x64] ss:$8 sps:$4 sm:$0xff]   ;;  %v1007_v29 = vld [vmem:[#allocation2 + $0x60] ss:$8 sps:$4 sm:$0xff]   ;;  %v1009_v31 = vld [vmem:[#allocation2 + $0x74] ss:$8 sps:$4 sm:$0xff]  }
  0x30   :  { %v1005_v28 = vld [vmem:[#allocation2 + $0x164] ss:$8 sps:$4 sm:$0xff]   ;;  %v1008_v30 = vld [vmem:[#allocation2 + $0x160] ss:$8 sps:$4 sm:$0xff]   ;;  %v1011_v32 = vld [vmem:[#allocation2 + $0x174] ss:$8 sps:$4 sm:$0xff]  }
  0x31   :  { %586 = vmatpush1.bf16.msra.mxu1 %v983_v13  ;;  %v1013_v33 = vld [vmem:[#allocation2 + $0x70] ss:$8 sps:$4 sm:$0xff]   ;;  %v1015_v35 = vld [vmem:[#allocation2 + $0x84] ss:$8 sps:$4 sm:$0xff]   ;;  %v1019_v37 = vld [vmem:[#allocation2 + $0x80] ss:$8 sps:$4 sm:$0xff]  }
  0x32   :  { %627 = vmatpush1.bf16.msra.mxu0 %v984_v14  ;;  %587 = vmatprep.subr.bf16.mxu1 %v985_v15  ;;  %v1014_v34 = vld [vmem:[#allocation2 + $0x170] ss:$8 sps:$4 sm:$0xff]   ;;  %v1017_v36 = vld [vmem:[#allocation2 + $0x184] ss:$8 sps:$4 sm:$0xff]   ;;  %v1020_v38 = vld [vmem:[#allocation2 + $0x180] ss:$8 sps:$4 sm:$0xff]  }
  0x33   :  { %628 = vmatprep.subr.bf16.mxu0 %v987_v16  ;;  %v1021_v39 = vld [vmem:[#allocation2 + $0x94] ss:$8 sps:$4 sm:$0xff]   ;;  %v1025_v41 = vld [vmem:[#allocation2 + $0x90] ss:$8 sps:$4 sm:$0xff]   ;;  %v1027_v43 = vld [vmem:[#allocation2 + $0xa4] ss:$8 sps:$4 sm:$0xff]  }
  0x34   :  { %v1023_v40 = vld [vmem:[#allocation2 + $0x194] ss:$8 sps:$4 sm:$0xff]   ;;  %v1026_v42 = vld [vmem:[#allocation2 + $0x190] ss:$8 sps:$4 sm:$0xff]   ;;  %v1029_v44 = vld [vmem:[#allocation2 + $0x1a4] ss:$8 sps:$4 sm:$0xff]  }
  0x35   :  { %588 = vmatpush1.bf16.msra.mxu1 %v989_v17  ;;  %v1031_v45 = vld [vmem:[#allocation2 + $0xa0] ss:$8 sps:$4 sm:$0xff]   ;;  %v1033_v47 = vld [vmem:[#allocation2 + $0xb4] ss:$8 sps:$4 sm:$0xff]   ;;  %v1037_v49 = vld [vmem:[#allocation2 + $0xb0] ss:$8 sps:$4 sm:$0xff]  }
  0x36   :  { %629 = vmatpush1.bf16.msra.mxu0 %v990_v18  ;;  %589 = vmatprep.subr.bf16.mxu1 %v991_v19  ;;  %v1032_v46 = vld [vmem:[#allocation2 + $0x1a0] ss:$8 sps:$4 sm:$0xff]   ;;  %v1035_v48 = vld [vmem:[#allocation2 + $0x1b4] ss:$8 sps:$4 sm:$0xff]   ;;  %v1038_v50 = vld [vmem:[#allocation2 + $0x1b0] ss:$8 sps:$4 sm:$0xff]  }
  0x37   :  { %630 = vmatprep.subr.bf16.mxu0 %v993_v20  ;;  %v1039_v51 = vld [vmem:[#allocation2 + $0xc4] ss:$8 sps:$4 sm:$0xff]   ;;  %v1043_v53 = vld [vmem:[#allocation2 + $0xc0] ss:$8 sps:$4 sm:$0xff]   ;;  %v1045_v55 = vld [vmem:[#allocation2 + $0xd4] ss:$8 sps:$4 sm:$0xff]  }
  0x38   :  { %v1041_v52 = vld [vmem:[#allocation2 + $0x1c4] ss:$8 sps:$4 sm:$0xff]   ;;  %v1044_v54 = vld [vmem:[#allocation2 + $0x1c0] ss:$8 sps:$4 sm:$0xff]   ;;  %v1047_v56 = vld [vmem:[#allocation2 + $0x1d4] ss:$8 sps:$4 sm:$0xff]  }
  0x39   :  { %590 = vmatpush1.bf16.msra.mxu1 %v995_v21  ;;  %v1049_v57 = vld [vmem:[#allocation2 + $0xd0] ss:$8 sps:$4 sm:$0xff]   ;;  %v1051_v59 = vld [vmem:[#allocation2 + $0xe4] ss:$8 sps:$4 sm:$0xff]   ;;  %v1055_v61 = vld [vmem:[#allocation2 + $0xe0] ss:$8 sps:$4 sm:$0xff]  }
  0x3a   :  { %631 = vmatpush1.bf16.msra.mxu0 %v996_v22  ;;  %591 = vmatprep.subr.bf16.mxu1 %v997_v23  ;;  %v1050_v58 = vld [vmem:[#allocation2 + $0x1d0] ss:$8 sps:$4 sm:$0xff]   ;;  %v1053_v60 = vld [vmem:[#allocation2 + $0x1e4] ss:$8 sps:$4 sm:$0xff]   ;;  %v1056_v62 = vld [vmem:[#allocation2 + $0x1e0] ss:$8 sps:$4 sm:$0xff]  }
  0x3b   :  { %632 = vmatprep.subr.bf16.mxu0 %v999_v24  ;;  %v1057_v63 = vld [vmem:[#allocation2 + $0xf4] ss:$8 sps:$4 sm:$0xff]   ;;  %v1061_v1 = vld [vmem:[#allocation2 + $0xf0] ss:$8 sps:$4 sm:$0xff]   ;;  %v1063_v3 = vld [vmem:[#allocation4 + $0x40] sm:$0xff]   ;;  %v64_v5 = vshrl.u32 %v63_v4, 7 }
  0x3c   :  { %v1059_v0 = vld [vmem:[#allocation2 + $0x1f4] ss:$8 sps:$4 sm:$0xff]   ;;  %v1062_v2 = vld [vmem:[#allocation2 + $0x1f0] ss:$8 sps:$4 sm:$0xff]  }
  0x3d   :  { %592 = vmatpush1.bf16.msra.mxu1 %v1001_v25  ;;  %v1202_v6 = vsub.s32 0, %v64_v5  ;;  %v73_v7 = vsub.s32 4, %v64_v5  ;;  %v69_v8 = vsub.s32 2, %v64_v5  ;;  %v77_v9 = vsub.s32 6, %v64_v5  ;;  %v56_v10 = vld [vmem:[%s1236_s1] sm:$0xff]  ;;  %v1070_v4 = vld [vmem:[#allocation4 + $0x18] sm:$0xff]  }
  0x3e   :  { %633 = vmatpush1.bf16.msra.mxu0 %v1002_v26  ;;  %593 = vmatprep.subr.bf16.mxu1 %v1003_v27  ;;  %v1207_v11 = vsub.s32 1, %v64_v5  ;;  %v113_v12 = vsub.s32 3, %v64_v5  ;;  %v117_v13 = vsub.s32 5, %v64_v5  ;;  %v121_v14 = vsub.s32 7, %v64_v5  ;;  %v151_v27 = vld [vmem:[%s1237_s2] sm:$0xf] }
  0x3f   :  { %634 = vmatprep.subr.bf16.mxu0 %v1005_v28  ;;  %v66_v15 = vrot.slane %v56_v10, %v1202_v6  ;;  %v74_v16 = vrot.slane %v56_v10, %v73_v7  ;;  %v70_v17 = vrot.slane %v56_v10, %v69_v8  ;;  %v78_v18 = vrot.slane %v56_v10, %v77_v9  ;;  %v1071_v5 = vld [vmem:[#allocation4 + $0x60] sm:$0xff]   ;;  %v1074_v9 = vld [vmem:[#allocation4 + $0x28] sm:$0xff]  }
  0x40   :  { %v110_v19 = vrot.slane %v56_v10, %v1207_v11  ;;  %v114_v20 = vrot.slane %v56_v10, %v113_v12  ;;  %v118_v21 = vrot.slane %v56_v10, %v117_v13  ;;  %v122_v22 = vrot.slane %v56_v10, %v121_v14  ;;  %v1072_v7 = vld [vmem:[#allocation4 + $0x20] sm:$0xff]   ;;  %v1075_v10 = vld [vmem:[#allocation4 + $0x70] sm:$0xff]   ;;  %v1077_v13 = vld [vmem:[#allocation4 + $0x78] sm:$0xff]  }
  0x41   :  { %594 = vmatpush1.bf16.msra.mxu1 %v1007_v29  ;;  %v86_v24 = vrot.slane %v66_v15, %v1202_v6  ;;  %v94_v25 = vrot.slane %v74_v16, %v1202_v6  ;;  %v90_v26 = vrot.slane %v70_v17, %v1202_v6  ;;  %v98_v28 = vrot.slane %v78_v18, %v1202_v6  ;;  %v1078_v14 = vld [vmem:[#allocation4 + $0x38] sm:$0xff]   ;;  %v249_v15 = vld [vmem:[%s1239_s4] sm:$0x3] }
  0x42   :  { %635 = vmatpush1.bf16.msra.mxu0 %v1008_v30  ;;  %595 = vmatprep.subr.bf16.mxu1 %v1009_v31  ;;  %v130_v29 = vrot.slane %v110_v19, %v1207_v11  ;;  %v134_v30 = vrot.slane %v114_v20, %v1207_v11  ;;  %v138_v31 = vrot.slane %v118_v21, %v1207_v11 }
  0x43   :  { %636 = vmatprep.subr.bf16.mxu0 %v1011_v32  ;;  %v142_v32 = vrot.slane %v122_v22, %v1207_v11  ;;  %v254_v16 = vrot.slane %v249_v15, %v1202_v6  ;;  %v258_v17 = vrot.slane %v249_v15, %v1207_v11 }
  0x45   :  { %596 = vmatpush1.bf16.msra.mxu1 %v1013_v33  ;;  %v160_v33 = vrot.slane %v151_v27, %v1207_v11  ;;  %v914_v11 = vld [vmem:[%s1241_s6] ss:$0 sm:$0xff] }
  0x46   :  { %637 = vmatpush1.bf16.msra.mxu0 %v1014_v34  ;;  %597 = vmatprep.subr.bf16.mxu1 %v1015_v35  ;;  %v168_v34 = vrot.slane %v151_v27, %v113_v12  ;;  %v156_v35 = vrot.slane %v151_v27, %v1202_v6  ;;  %v1076_v12 = vld [vmem:[#allocation4 + $0x30] sm:$0xff]  }
  0x47   :  { %638 = vmatprep.subr.bf16.mxu0 %v1017_v36  ;;  %v164_v36 = vrot.slane %v151_v27, %v69_v8  ;;  %v1073_v8 = vld [vmem:[#allocation4 + $0x68] sm:$0xff]  }
  0x49   :  { %598 = vmatpush1.bf16.msra.mxu1 %v1019_v37 }
  0x4a   :  { %639 = vmatpush1.bf16.msra.mxu0 %v1020_v38  ;;  %599 = vmatprep.subr.bf16.mxu1 %v1021_v39 }
  0x4b   :  { %640 = vmatprep.subr.bf16.mxu0 %v1023_v40 }
  0x4d   :  { %600 = vmatpush1.bf16.msra.mxu1 %v1025_v41 }
  0x4e   :  { %641 = vmatpush1.bf16.msra.mxu0 %v1026_v42  ;;  %601 = vmatprep.subr.bf16.mxu1 %v1027_v43 }
  0x4f   :  { %642 = vmatprep.subr.bf16.mxu0 %v1029_v44 }
  0x51   :  { %602 = vmatpush1.bf16.msra.mxu1 %v1031_v45 }
  0x52   :  { %643 = vmatpush1.bf16.msra.mxu0 %v1032_v46  ;;  %603 = vmatprep.subr.bf16.mxu1 %v1033_v47 }
  0x53   :  { %644 = vmatprep.subr.bf16.mxu0 %v1035_v48 }
  0x55   :  { %604 = vmatpush1.bf16.msra.mxu1 %v1037_v49 }
  0x56   :  { %645 = vmatpush1.bf16.msra.mxu0 %v1038_v50  ;;  %605 = vmatprep.subr.bf16.mxu1 %v1039_v51 }
  0x57   :  { %646 = vmatprep.subr.bf16.mxu0 %v1041_v52 }
  0x59   :  { %606 = vmatpush1.bf16.msra.mxu1 %v1043_v53 }
  0x5a   :  { %647 = vmatpush1.bf16.msra.mxu0 %v1044_v54  ;;  %607 = vmatprep.subr.bf16.mxu1 %v1045_v55 }
  0x5b   :  { %648 = vmatprep.subr.bf16.mxu0 %v1047_v56 }
  0x5d   :  { %608 = vmatpush1.bf16.msra.mxu1 %v1049_v57 }
  0x5e   :  { %649 = vmatpush1.bf16.msra.mxu0 %v1050_v58  ;;  %609 = vmatprep.subr.bf16.mxu1 %v1051_v59 }
  0x5f   :  { %650 = vmatprep.subr.bf16.mxu0 %v1053_v60 }
  0x61   :  { %610 = vmatpush1.bf16.msra.mxu1 %v1055_v61 }
  0x62   :  { %651 = vmatpush1.bf16.msra.mxu0 %v1056_v62  ;;  %611 = vmatprep.subr.bf16.mxu1 %v1057_v63  ;;  %v1064_v62 = vld [vmem:[#allocation4] sm:$0xff]   ;;  %v1065_v63 = vld [vmem:[#allocation4 + $0x48] sm:$0xff]  }
  0x63   :  { %652 = vmatprep.subr.bf16.mxu0 %v1059_v0  ;;  %v1066_v0 = vld [vmem:[#allocation4 + $0x8] sm:$0xff]  }
  0x65   :  { %612 = vmatpush1.bf16.msra.mxu1 %v1061_v1  ;;  %v1067_v1 = vld [vmem:[#allocation4 + $0x50] sm:$0xff]  }
  0x66   :  { %653 = vmatpush1.bf16.msra.mxu0 %v1062_v2  ;;  %931 = vmatprep.subr.bf16.mxu1 %v1063_v3  ;;  %v1068_v2 = vld [vmem:[#allocation4 + $0x10] sm:$0xff]   ;;  %v1069_v3 = vld [vmem:[#allocation4 + $0x58] sm:$0xff]  }
  0xa7   :  { %v60_v23 = vpop.permute.xlu0 %59 }
  0xa8   :  { %v99_v37 = vmul.f32 %v86_v24, %v60_v23  ;;  %v101_v38 = vmul.f32 %v94_v25, %v60_v23  ;;  %v100_v40 = vmul.f32 %v90_v26, %v60_v23  ;;  %v102_v41 = vmul.f32 %v98_v28, %v60_v23 }
  0xac   :  { %v105_v39 = vpop.permute.xlu0 %104 }
  0xad   :  { %v143_v42 = vmul.f32 %v130_v29, %v105_v39  ;;  %v144_v43 = vmul.f32 %v134_v30, %v105_v39  ;;  %v145_v44 = vmul.f32 %v138_v31, %v105_v39  ;;  %v146_v45 = vmul.f32 %v142_v32, %v105_v39 }
  0xaf   :  { %v147_v46 = vadd.f32 %v143_v42, %v99_v37  ;;  %v149_v47 = vadd.f32 %v145_v44, %v101_v38  ;;  %v148_v48 = vadd.f32 %v144_v43, %v100_v40  ;;  %v150_v49 = vadd.f32 %v146_v45, %v102_v41 }
  0xb1   :  { %v174_v50 = vadd.f32 %v160_v33, %v148_v48  ;;  %v176_v51 = vadd.f32 %v168_v34, %v150_v49  ;;  %v173_v52 = vadd.f32 %v156_v35, %v147_v46  ;;  %v175_v53 = vadd.f32 %v164_v36, %v149_v47 }
  0xb3   :  { %v178_v54 = vmax.f32 %v174_v50, 0.0  ;;  %v180_v55 = vmax.f32 %v176_v51, 0.0  ;;  %v177_v56 = vmax.f32 %v173_v52, 0.0  ;;  %v179_v57 = vmax.f32 %v175_v53, 0.0 }
  0xb5   :  { %v182_v58 = vpack.c.bf16 %v178_v54, %v178_v54  ;;  %v184_v59 = vpack.c.bf16 %v180_v55, %v180_v55  ;;  %v181_v60 = vpack.c.bf16 %v177_v56, %v177_v56  ;;  %v183_v61 = vpack.c.bf16 %v179_v57, %v179_v57 }
  0xb7   :  { %613 = vmatprep.mubr.bf16.mxu1 %v182_v58  ;;  %654 = vmatprep.mubr.bf16.mxu0 %v184_v59 }
  0xb8   :  { %614 = vmatmul.mubr.bf16.vlgmr.msra.gmra.mrb[0].mxu1 %v181_v60  ;;  %655 = vmatmul.mubr.bf16.vlgmr.msra.gmra.mrb[0].mxu0 %v183_v61 }
  0xb9   :  { %932 = vmatpush3.bf16.msra.mxu1 %v1064_v62 }
  0xba   :  { %933 = vmatprep.subr.bf16.mxu1 %v1065_v63 }
  0xbd   :  { %934 = vmatpush3.bf16.msra.mxu1 %v1066_v0 }
  0xbe   :  { %935 = vmatprep.subr.bf16.mxu1 %v1067_v1 }
  0xc1   :  { %936 = vmatpush3.bf16.msra.mxu1 %v1068_v2 }
  0xc2   :  { %937 = vmatprep.subr.bf16.mxu1 %v1069_v3 }
  0xc5   :  { %938 = vmatpush3.bf16.msra.mxu1 %v1070_v4 }
  0xc6   :  { %939 = vmatprep.subr.bf16.mxu1 %v1071_v5 }
  0xc9   :  { %940 = vmatpush3.bf16.msra.mxu1 %v1072_v7 }
  0xca   :  { %941 = vmatprep.subr.bf16.mxu1 %v1073_v8 }
  0xcd   :  { %942 = vmatpush3.bf16.msra.mxu1 %v1074_v9 }
  0xce   :  { %943 = vmatprep.subr.bf16.mxu1 %v1075_v10 }
  0xd1   :  { %944 = vmatpush3.bf16.msra.mxu1 %v1076_v12 }
  0xd2   :  { %945 = vmatprep.subr.bf16.mxu1 %v1077_v13 }
  0xd5   :  { %946 = vmatpush3.bf16.msra.mxu1 %v1078_v14 }
 0x18b   :  { %v615_v18 = vpop.f32.mrb[0].mxu1  ;;  %v656_v19 = vpop.f32.mrb[0].mxu0 }
 0x18c   :  { %v616_v20 = vadd.f32 %v615_v18, %v254_v16  ;;  %v617_v21 = vpop.f32.mrb[1].mxu1  ;;  %v658_v22 = vpop.f32.mrb[1].mxu0 }
 0x18d   :  { %v618_v23 = vadd.f32 %v617_v21, %v258_v17  ;;  %v619_v24 = vpop.f32.mrb[2].mxu1  ;;  %v660_v25 = vpop.f32.mrb[2].mxu0 }
 0x18e   :  { %v657_v26 = vadd.f32 %v656_v19, %v616_v20  ;;  %v620_v27 = vpop.f32.mrb[3].mxu1  ;;  %v661_v28 = vpop.f32.mrb[3].mxu0 }
 0x18f   :  { %v659_v29 = vadd.f32 %v658_v22, %v618_v23 }
 0x190   :  { %v663_v30 = vmax.f32 %v657_v26, 0.0 }
 0x191   :  { %v664_v31 = vmax.f32 %v659_v29, 0.0 }
 0x192   :  { %v665_v33 = vpack.c.bf16 %v663_v30, %v663_v30 }
 0x193   :  { %v666_v32 = vpack.c.bf16 %v664_v31, %v664_v31 }
 0x195   :  { %834 = vmatprep.mubr.bf16.mxu1 %v666_v32 }
 0x196   :  { %835 = vmatmul.mubr.bf16.vlgmr.msra.gmra.mrb[4].mxu1 %v665_v33 }
 0x269   :  { %v947_v6 = vpop.f32.mrb[4].mxu1 }
 0x26a   :  { %v948_v34 = vpop.f32.mrb[5].mxu1 }
 0x26b   :  { %v949_v35 = vadd.f32 %v948_v34, %v947_v6  ;;  %v950_v36 = vpop.f32.mrb[6].mxu1 }
 0x26c   :  { %v951_v37 = vpop.f32.mrb[7].mxu1 }
 0x26d   :  { %v837_v38 = vadd.f32 %v949_v35, %v914_v11 }
 0x26f   :  { %843 = vst.msk [vmem:[%s1242_s7] sm:$0xff] %vm842_vm0, %v837_v38 }
 0x270   :  { %848 = vsyncpa [#allocation3], 1 }
 0x271   :  { %849 = vsyncpa [#allocation5], 1 }

</bundles_post_ra>
